<compile_context>
chip_gen: v7x
topology: tpu7x:2x2x1
jax: 0.10.0
libtpu: 0.0.40
codegen_flags: <defaults>
</compile_context>

<pallas_src>
import functools

import jax
import jax.numpy as jnp
from jax.experimental import pallas as pl
from jax.experimental.pallas import tpu as pltpu


def _kd_kernel(s_ref, t_ref, o_ref, *, T, scale, batch, block_rows, blocks_per_shard):
    # s_ref: student probabilities (TB, C); t_ref: teacher logits (TB, C)
    # o_ref: per-shard partial sum, shape (1, 1, 1), resident across the j axis.
    shard = pl.program_id(0)
    j = pl.program_id(1)

    @pl.when(j == 0)
    def _():
        o_ref[...] = jnp.zeros_like(o_ref)

    s = s_ref[...].astype(jnp.float32)
    t = t_ref[...].astype(jnp.float32) * (1.0 / T)

    # Numerically-stable softmax pieces over the class (lane) axis.
    m = jnp.max(t, axis=1, keepdims=True)          # (TB, 1)   XLU reduce
    tm = t - m                                     # (TB, C)
    e = jnp.exp(tm)                                # (TB, C)   EUP
    denom = jnp.sum(e, axis=1, keepdims=True)      # (TB, 1)   XLU reduce
    inv_denom = 1.0 / denom                        # (TB, 1)   per-row only
    log_denom = jnp.log(denom)                     # (TB, 1)   per-row only

    log_s = jnp.log(s)                             # (TB, C)   EUP (input is probs)

    # sum_j p_j*(log_t_j - log_s_j)
    #   = inv_denom * sum_j e_j*(tm_j - log_s_j) - log_denom
    inner = jnp.sum(e * (tm - log_s), axis=1, keepdims=True)   # (TB, 1)
    per_row = inner * inv_denom - log_denom                    # (TB, 1)

    # Mask rows outside the real batch (partial boundary tile and/or the padded
    # blocks introduced by the shard split). jnp.where selects, so NaN/Inf from
    # garbage padded rows cannot leak into the sum.
    logical_block = shard * blocks_per_shard + j
    row0 = logical_block * block_rows
    row_ids = row0 + jax.lax.broadcasted_iota(jnp.int32, per_row.shape, 0)
    per_row = jnp.where(row_ids < batch, per_row, 0.0)

    o_ref[...] += jnp.sum(per_row, axis=0, keepdims=True)[None]   # (1, 1, 1)

    # Finalize this shard's partial: apply scale*T*T and the 1/B of the mean.
    @pl.when(j == pl.num_programs(1) - 1)
    def _():
        o_ref[...] = o_ref[...] * (scale * T * T / batch)


def _pick_block_rows(B, C, itemsize):
    # Keep 2 inputs x 2 pipeline buffers x TB*C*itemsize under ~12 MiB so the
    # default scoped VMEM limit is respected on every generation
    # (v5e: 16 MiB scoped, v6e: 32 MiB, v7x: 64 MiB physical but less scoped).
    budget = 12 * 1024 * 1024
    tb = budget // (4 * C * itemsize)
    tb = int(max(8, min(tb, 2048)))
    tb = (tb // 8) * 8                            # sublane-aligned when TB < B
    return B if B <= tb else tb


def soft_target_kd_loss(out_student, out_teacher, T=2.0, scale=1.0,
                        block_rows=None, num_shards=2):
    """out_student: probabilities (B, C); out_teacher: logits (B, C).

    Inputs may be f32 / bf16 / fp16 (math is f32 in-kernel). Returns shape (1,).
    """
    assert out_student.shape == out_teacher.shape and out_student.ndim == 2
    B, C = out_student.shape
    itemsize = max(jnp.dtype(out_student.dtype).itemsize,
                   jnp.dtype(out_teacher.dtype).itemsize)
    if block_rows is None:
        block_rows = _pick_block_rows(B, C, itemsize)

    total_blocks = pl.cdiv(B, block_rows)
    ns = max(1, int(num_shards))                  # 2 -> megacore split on v7x
    blocks_per_shard = pl.cdiv(total_blocks, ns)

    def in_index(s, j):
        # Clamp so shard-padding steps re-read a valid block (their rows are
        # masked out in the kernel anyway).
        blk = jnp.minimum(s * blocks_per_shard + j, total_blocks - 1)
        return (blk, 0)

    kernel = functools.partial(
        _kd_kernel, T=float(T), scale=float(scale), batch=B,
        block_rows=block_rows, blocks_per_shard=blocks_per_shard)

    partials = pl.pallas_call(
        kernel,
        out_shape=jax.ShapeDtypeStruct((ns, 1, 1), jnp.float32),
        grid=(ns, blocks_per_shard),
        in_specs=[
            pl.BlockSpec((block_rows, C), in_index),
            pl.BlockSpec((block_rows, C), in_index),
        ],
        out_specs=pl.BlockSpec((1, 1, 1), lambda s, j: (s, 0, 0)),
        compiler_params=pltpu.CompilerParams(
            dimension_semantics=("parallel", "arbitrary")),
    )(out_student, out_teacher)

    # Tiny cross-shard reduction (ns elements) in the wrapper.
    return jnp.sum(partials).reshape(1)


def _reference(out_student, out_teacher, T=2.0, scale=1.0):
    s = out_student.astype(jnp.float32)
    t = out_teacher.astype(jnp.float32)
    log_t = jax.nn.log_softmax(t / T, axis=1)
    loss = jnp.exp(log_t) * (log_t - jnp.log(s)) * scale * T * T
    return jnp.mean(jnp.sum(loss, axis=1), axis=0, keepdims=True)


def _check(B, C, dtype, block_rows=None, T=2.0, scale=1.0, seed=0):
    key = jax.random.PRNGKey(seed)
    k1, k2 = jax.random.split(key)
    # Student output is expected to be probabilities (PyTorch takes torch.log of it).
    s = jax.nn.softmax(jax.random.normal(k1, (B, C), dtype=jnp.float32), axis=1)
    t = jax.random.normal(k2, (B, C), dtype=jnp.float32)
    s = s.astype(dtype)
    t = t.astype(dtype)

    out = soft_target_kd_loss(s, t, T=T, scale=scale, block_rows=block_rows)
    jax.block_until_ready(out)

    ref = _reference(s, t, T=T, scale=scale)
    assert out.shape == (1,), out.shape
    assert jnp.allclose(out, ref, rtol=2e-5, atol=1e-6), (B, C, str(dtype), out, ref)


if __name__ == "__main__":
    # Small demo shapes consistent with the module's (B, C) inputs.
    _check(2, 16, jnp.float32)                     # single tile, shard 1 fully masked
    _check(20, 128, jnp.float32, block_rows=8)     # partial boundary tile + shard padding
    _check(32, 128, jnp.bfloat16, block_rows=8)    # bf16 inputs (half the HBM traffic)
    _check(8, 32, jnp.float32, T=3.0, scale=0.5)   # non-default T / scale
    print("KERNEL_OK")
</pallas_src>

<mosaic_0001>
module attributes {stable_mosaic.version = 11 : i64} {
  func.func @_kd_kernel(%arg0: i32, %arg1: i32, %arg2: memref<2x16xf32, #tpu.memory_space<vmem>>, %arg3: memref<2x16xf32, #tpu.memory_space<vmem>>, %arg4: memref<1x1x1xf32, #tpu.memory_space<vmem>>) attributes {dimension_semantics = [#tpu.dimension_semantics<parallel>, #tpu.dimension_semantics<arbitrary>], iteration_bounds = array<i64: 2, 1>, scalar_prefetch = 0 : i64, scratch_operands = 0 : i64, tpu.core_type = #tpu.core_type<tc>, window_params = [{transform_indices = @transform_0, window_bounds = array<i64: 2, 16>}, {transform_indices = @transform_1, window_bounds = array<i64: 2, 16>}, {transform_indices = @transform_2, window_bounds = array<i64: 1, 1, 1>}]} {
    %c0_i32 = arith.constant 0 : i32
    %0 = arith.cmpi eq, %arg1, %c0_i32 : i32
    %1 = arith.extui %0 : i1 to i32
    %c0_i32_0 = arith.constant 0 : i32
    %2 = arith.cmpi ne, %1, %c0_i32_0 : i32
    scf.if %2 {
      %cst_19 = arith.constant 0.000000e+00 : f32
      %43 = vector.broadcast %cst_19 : f32 to vector<1x1x1xf32>
      %c0_20 = arith.constant 0 : index
      %c0_21 = arith.constant 0 : index
      %c0_22 = arith.constant 0 : index
      %44 = vector.load %arg4[%c0_20, %c0_21, %c0_22] : memref<1x1x1xf32, #tpu.memory_space<vmem>>, vector<1x1x1xf32>
      tpu.vector_store %arg4[%c0_20, %c0_21, %c0_22], %43 {strides = array<i32>} : memref<1x1x1xf32, #tpu.memory_space<vmem>>, vector<1x1x1xf32>,
    } else {
    }
    %c0 = arith.constant 0 : index
    %c0_1 = arith.constant 0 : index
    %3 = vector.load %arg2[%c0, %c0_1] : memref<2x16xf32, #tpu.memory_space<vmem>>, vector<2x16xf32>
    %c0_2 = arith.constant 0 : index
    %c0_3 = arith.constant 0 : index
    %4 = vector.load %arg3[%c0_2, %c0_3] : memref<2x16xf32, #tpu.memory_space<vmem>>, vector<2x16xf32>
    %cst = arith.constant 5.000000e-01 : f32
    %5 = vector.broadcast %cst : f32 to vector<2x16xf32>
    %6 = arith.mulf %4, %5 : vector<2x16xf32>
    %cst_4 = arith.constant dense<0xFF800000> : vector<2xf32>
    %7 = vector.multi_reduction <maximumf>, %6, %cst_4 [1] : vector<2x16xf32> to vector<2xf32>
    %8 = vector.shape_cast %7 : vector<2xf32> to vector<2x1xf32>
    %9 = vector.broadcast %8 : vector<2x1xf32> to vector<2x16xf32>
    %10 = arith.subf %6, %9 : vector<2x16xf32>
    %11 = math.exp %10 : vector<2x16xf32>
    %cst_5 = arith.constant dense<0.000000e+00> : vector<2xf32>
    %12 = vector.multi_reduction <add>, %11, %cst_5 [1] : vector<2x16xf32> to vector<2xf32>
    %13 = vector.shape_cast %12 : vector<2xf32> to vector<2x1xf32>
    %cst_6 = arith.constant 1.000000e+00 : f32
    %14 = vector.broadcast %cst_6 : f32 to vector<2x1xf32>
    %15 = arith.divf %14, %13 : vector<2x1xf32>
    %16 = math.log %13 : vector<2x1xf32>
    %17 = math.log %3 : vector<2x16xf32>
    %18 = arith.subf %10, %17 : vector<2x16xf32>
    %19 = arith.mulf %11, %18 : vector<2x16xf32>
    %cst_7 = arith.constant dense<0.000000e+00> : vector<2xf32>
    %20 = vector.multi_reduction <add>, %19, %cst_7 [1] : vector<2x16xf32> to vector<2xf32>
    %21 = vector.shape_cast %20 : vector<2xf32> to vector<2x1xf32>
    %22 = arith.mulf %21, %15 : vector<2x1xf32>
    %23 = arith.subf %22, %16 : vector<2x1xf32>
    %c1_i32 = arith.constant 1 : i32
    %24 = arith.muli %arg0, %c1_i32 : i32
    %25 = arith.addi %24, %arg1 : i32
    %c2_i32 = arith.constant 2 : i32
    %26 = arith.muli %25, %c2_i32 : i32
    %27 = tpu.iota {dimensions = array<i32: 0>} : vector<2x1xi32>
    %28 = vector.broadcast %26 : i32 to vector<2x1xi32>
    %29 = arith.addi %28, %27 : vector<2x1xi32>
    %c2_i32_8 = arith.constant 2 : i32
    %30 = vector.broadcast %c2_i32_8 : i32 to vector<2x1xi32>
    %31 = arith.cmpi slt, %29, %30 : vector<2x1xi32>
    %cst_9 = arith.constant 0.000000e+00 : f32
    %32 = vector.broadcast %cst_9 : f32 to vector<2x1xf32>
    %33 = arith.select %31, %23, %32 : vector<2x1xi1>, vector<2x1xf32>
    %c0_10 = arith.constant 0 : index
    %c0_11 = arith.constant 0 : index
    %c0_12 = arith.constant 0 : index
    %34 = vector.load %arg4[%c0_10, %c0_11, %c0_12] : memref<1x1x1xf32, #tpu.memory_space<vmem>>, vector<1x1x1xf32>
    %cst_13 = arith.constant dense<0.000000e+00> : vector<1xf32>
    %35 = vector.multi_reduction <add>, %33, %cst_13 [0] : vector<2x1xf32> to vector<1xf32>
    %36 = vector.shape_cast %35 : vector<1xf32> to vector<1x1xf32>
    %37 = vector.shape_cast %36 : vector<1x1xf32> to vector<1x1x1xf32>
    %38 = arith.addf %34, %37 : vector<1x1x1xf32>
    %c0_14 = arith.constant 0 : index
    %c0_15 = arith.constant 0 : index
    %c0_16 = arith.constant 0 : index
    %39 = vector.load %arg4[%c0_14, %c0_15, %c0_16] : memref<1x1x1xf32, #tpu.memory_space<vmem>>, vector<1x1x1xf32>
    tpu.vector_store %arg4[%c0_14, %c0_15, %c0_16], %38 {strides = array<i32>} : memref<1x1x1xf32, #tpu.memory_space<vmem>>, vector<1x1x1xf32>,
    %c0_i32_17 = arith.constant 0 : i32
    %40 = arith.cmpi eq, %arg1, %c0_i32_17 : i32
    %41 = arith.extui %40 : i1 to i32
    %c0_i32_18 = arith.constant 0 : i32
    %42 = arith.cmpi ne, %41, %c0_i32_18 : i32
    scf.if %42 {
      %c0_19 = arith.constant 0 : index
      %c0_20 = arith.constant 0 : index
      %c0_21 = arith.constant 0 : index
      %43 = vector.load %arg4[%c0_19, %c0_20, %c0_21] : memref<1x1x1xf32, #tpu.memory_space<vmem>>, vector<1x1x1xf32>
      %cst_22 = arith.constant 2.000000e+00 : f32
      %44 = vector.broadcast %cst_22 : f32 to vector<1x1x1xf32>
      %45 = arith.mulf %43, %44 : vector<1x1x1xf32>
      %c0_23 = arith.constant 0 : index
      %c0_24 = arith.constant 0 : index
      %c0_25 = arith.constant 0 : index
      %46 = vector.load %arg4[%c0_23, %c0_24, %c0_25] : memref<1x1x1xf32, #tpu.memory_space<vmem>>, vector<1x1x1xf32>
      tpu.vector_store %arg4[%c0_23, %c0_24, %c0_25], %45 {strides = array<i32>} : memref<1x1x1xf32, #tpu.memory_space<vmem>>, vector<1x1x1xf32>,
    } else {
    }
    return
  }
  func.func @transform_0(%arg0: i32, %arg1: i32) -> (i32, i32) {
    %c1_i32 = arith.constant 1 : i32
    %0 = arith.muli %arg0, %c1_i32 : i32
    %1 = arith.addi %0, %arg1 : i32
    %c0_i32 = arith.constant 0 : i32
    %2 = arith.minsi %1, %c0_i32 : i32
    %c0_i32_0 = arith.constant 0 : i32
    %c0_i32_1 = arith.constant 0 : i32
    return %2, %c0_i32_0 : i32, i32
  }
  func.func @transform_1(%arg0: i32, %arg1: i32) -> (i32, i32) {
    %c1_i32 = arith.constant 1 : i32
    %0 = arith.muli %arg0, %c1_i32 : i32
    %1 = arith.addi %0, %arg1 : i32
    %c0_i32 = arith.constant 0 : i32
    %2 = arith.minsi %1, %c0_i32 : i32
    %c0_i32_0 = arith.constant 0 : i32
    %c0_i32_1 = arith.constant 0 : i32
    return %2, %c0_i32_0 : i32, i32
  }
  func.func @transform_2(%arg0: i32, %arg1: i32) -> (i32, i32, i32) {
    %c0_i32 = arith.constant 0 : i32
    %c0_i32_0 = arith.constant 0 : i32
    %c0_i32_1 = arith.constant 0 : i32
    return %arg0, %c0_i32, %c0_i32_0 : i32, i32, i32
  }
}

</mosaic_0001>

<bundles_post_ra>
// kernel: tpu_custom_call.1
= control target key start
LH: loop header
LB: loop body
LE: loop exit
PB: predicated region body
PF: predicated region fallthrough
CT: control target
= control target key end

     0   :  { %7 = vsyncpa [#allocation3], 0  ;;  %s635_s0 = inlined_call_operand.hbm [shape: f32[2,16], index: 0, kind: input, shape index: {}]   ;;  %s636_s1 = inlined_call_operand.vmem [shape: f32[2,16], index: 1, kind: input, shape index: {}]   ;;  %s637_s2 = inlined_call_operand.vmem [shape: f32[2,1,1], index: 2, kind: output, shape index: {}]  }
   0x1   :  { %9 = vsyncpa [#allocation3 + $0x1], 0  ;;  %s531_s9 = smov 0   ;;  %s533_s10 = smov 0  }
   0x2   :  { %s535_s11 = smov 0   ;;  %s537_s12 = smov 0  }
   0x3   :  { %s539_s13 = smov 0  }
   0x4 LB: > { %s356_s14 = sadd.s32 4294967295, %s512_s13   ;;  %s27_s15 = sadd.s32 1, %s508_s12  ;;  %s512_s13 = sphi %s539_s13, %s15_s13   ;;  %s508_s12 = sphi %s537_s12, %s648_s12   ;;  %s504_s11 = sphi %s535_s11, %s647_s11   ;;  %s500_s10 = sphi %s533_s10, %s625_s10   ;;  %s496_s9 = sphi %s531_s9, %s646_s9  }
   0x5   : > { %p29_p0 = scmp.ge.s32.totalorder %s27_s15, 2  ;;  %p493_p1 = scmp.ne.s32.totalorder %s500_s10, 0 }
   0x6   : > { %p48_p2 = scmp.eq.s32.totalorder %s512_s13, 0  ;;  %p53_p3 = scmp.ne.s32.totalorder %s500_s10, %s496_s9 }
   0x7   : > { %s650_s15 = smov (%p29_p0, %s27_s15), 0  ;;  %p54_p4 = scmp.eq.s32.totalorder %s356_s14, 0 }
   0x8   : > { %p49_p5 = por %p493_p1, %p48_p2  ;;  %p377_p7 = scmp.lt.s32.totalorder %s512_s13, 2 }
   0x9   : > { %p561_p6 = por %p54_p4, %p53_p3  ;;  %s514_s17 = smov [#allocation2]  }
   0xa   : > { %s149_s18 = sshll.u32 %s514_s17, 4  ;;  %p566_p8 = pnand %p377_p7, %p49_p5  ;;  %s150_s18 = int_to_ptr.vmem [resolvable:$true] %s149_s18 }
   0xb   : > { %s640_s16 = scalar_select %p561_p6, 1, 0 }
   0xc   : > { %s641_s19 = scalar_select %p566_p8, 1, 0 }
   0xd   : > { %s435_s22 = scalar_lea.hbm %s635_s0, 32  ;;  %p437_p12 = pneg %p566_p8 }
   0xe   : > { %p436_p11 = scmp.ne.s32.totalorder %s635_s0, %s435_s22  ;;  %p442_p1 = scmp.lt.u32.totalorder %s435_s22, %s435_s22 }
   0xf   : > { %p444_p2 = scmp.lt.u32.totalorder %s435_s22, %s635_s0 }
  0x10   : > { %p438_p13 = pnand %p437_p12, %p436_p11 }
  0x11   : > { %p445_p3 = por %p444_p2, %p442_p1 }
  0x12   : > { %p439_p0 = pneg %p438_p13 }
  0x14   : > { %p446_p4 = pnand %p445_p3, %p439_p0 }
  0x16   : > { %449 = shalt.err (!%p446_p4)
}
  0x17   : > { %s450_s27 = scalar_lea.vmem %s150_s18, 32  ;;  %s457_s28 = scalar_lea.vmem %s150_s18, 64 }
  0x18   : > { %p451_p5 = scmp.ne.s32.totalorder %s150_s18, %s450_s27  ;;  %p458_p10 = scmp.lt.s32.totalorder %s150_s18, %s150_s18 }
  0x19   : > { %p459_p6 = scmp.lt.s32.totalorder %s457_s28, %s450_s27 }
  0x1a   : > { %p453_p7 = pnand %p451_p5, %p437_p12 }
  0x1b   : > { %p460_p8 = por %p459_p6, %p458_p10 }
  0x1c   : > { %p454_p9 = pneg %p453_p7 }
  0x1e   : > { %p461_p11 = pnand %p460_p8, %p454_p9 }
  0x20   : > { %464 = shalt.err (!%p461_p11)
}
  0x21   : > { %p642_p13 = scmp.ne.s32.totalorder %s641_s19, 0  ;;  %p643_p0 = scmp.lt.s32.totalorder %s512_s13, 3 }
  0x22   : > { %p644_p1 = scmp.ge.s32.totalorder %s512_s13, 1 }
  0x23   : > { %376 = dma.hbm_to_vmem [thread:$0]  (!%p642_p13), %s635_s0, 32, %s150_s18, [#allocation3]  }
  0x24   : > { %p168_p2 = pnand %p644_p1, %p643_p0 }
  0x25   : > { %s173_s3 = sand.u32 (!%p168_p2), 1, %s500_s10   ;;  %p645_p6 = scmp.ne.s32.totalorder (!%p168_p2), %s640_s16, 0 }
  0x26   : > { %171 = sbr.rel (%p168_p2) target bundleno = 401 (0x191), region = 28  ;;  %s363_s4 = sshll.u32 (!%p168_p2), %s173_s3, 1 }
  0x27   : > { %s174_s5 = scalar_lea.sflag (!%p168_p2), [#allocation3], %s173_s3  ;;  %s177_s6 = scalar_lea.vmem (!%p168_p2), [#allocation2], %s363_s4 }
  0x2d   : > { %490 = dma.done.wait (%p645_p6), %s174_s5, 32  }
  0x2e   : > { %492 = vsyncadd (%p645_p6), %s174_s5, 4294967264  ;;  %p216_p8 = scmp.lt.s32.totalorder %s504_s11, 1  ;;  %p207_p9 = scmp.lt.s32.totalorder %s504_s11, 0  ;;  %vm223_vm0 = vcmask 0   ;;  %v515_v0 = vmov 0.0   ;;  %vm228_vm1 = vcmask 123904   ;;  %v253_v16 = vlaneseq }
  0x2f   : > { %v225_v4 = vld [vmem:[%s177_s6] sm:$0x3]  ;;  %s368_s21 = sshll.u32 %s504_s11, 1  ;;  %vm260_vm3 = vcmask 1041408  }
  0x30   : > { %s217_s7 = scalar_select %p216_p8, %s504_s11, 1  ;;  %427 = vlog2.f32 %v225_v4  ;;  %v254_v17 = vshrl.u32 %v253_v16, 7  ;;  %v255_v18 = vstv %s368_s21 }
  0x31   : > { %s208_s8 = scalar_select %p207_p9, %s504_s11, 0 }
  0x32   : > { %s604_s17 = scalar_lea.vmem %s637_s2, %s217_s7  ;;  %v256_v19 = vadd.s32 %v255_v18, %v254_v17 }
  0x33   : > { %224 = vst.msk [vmem:[%s604_s17] sm:$0x1] %vm223_vm0, %v515_v0  ;;  %s652_s8 = smov (!%p207_p9, %s208_s8), 0 }
  0x34   : > { %s367_s16 = sshll.u32 %s652_s8, 1  ;;  %vm257_vm2 = vcmp.lt.s32.totalorder %v256_v19, 2 }
  0x35   : > { %s212_s20 = scalar_lea.vmem %s636_s1, %s367_s16 }
  0x36   : > { %v226_v1 = vld [vmem:[%s212_s20] sm:$0x3] }
  0x37   : > { %v227_v2 = vmul.f32 0.5, %v226_v1 }
  0x39   : > { %v229_v3 = vsel %vm228_vm1, %v227_v2, -inf }
  0x3a   : > { %230 = vmax.xlane.f32.xlu0 %v229_v3  ;;  %v428_v8 = vpop.eup %427  ;;  %v259_v33 = vld [vmem:[%s604_s17] sm:$0x1] }
  0x3b   : > { %v243_v9 = vmul.f32 0.6931472, %v428_v8 }
  0xc7   : > { %v231_v5 = vpop.xlane.xlu0 %230 }
  0xc8   : > { %v232_v6 = vsub.f32 %v227_v2, %v231_v5 }
  0xca   : > { %v233_v7 = vmul.f32 1.442695, %v232_v6  ;;  %v244_v10 = vsub.f32 %v232_v6, %v243_v9 }
  0xcc   : > { %429 = vpow2.f32 %v233_v7 }
  0xd6   : > { %v430_v11 = vpop.eup %429 }
  0xd7   : > { %v235_v12 = vsel %vm228_vm1, %v430_v11, 0.0  ;;  %v245_v13 = vmul.f32 %v430_v11, %v244_v10 }
  0xd8   : > { %236 = vadd.xlane.f32.xlu0 %v235_v12 }
  0xd9   : > { %v246_v14 = vsel %vm228_vm1, %v245_v13, 0.0 }
  0xda   : > { %247 = vadd.xlane.f32.xlu1 %v246_v14 }
 0x165   : > { %v237_v15 = vpop.xlane.xlu0 %236 }
 0x166   : > { %431 = vrcp.f32 %v237_v15 }
 0x167   : > { %433 = vlog2.f32 %v237_v15  ;;  %v248_v21 = vpop.xlane.xlu1 %247 }
 0x170   : > { %v432_v20 = vpop.eup %431 }
 0x171   : > { %v434_v22 = vpop.eup %433  ;;  %v249_v23 = vmul.f32 %v432_v20, %v248_v21 }
 0x172   : > { %v241_v24 = vmul.f32 0.6931472, %v434_v22 }
 0x174   : > { %v250_v25 = vsub.f32 %v249_v23, %v241_v24 }
 0x176   : > { %v258_v26 = vsel %vm257_vm2, %v250_v25, 0.0 }
 0x177   : > { %v261_v27 = vsel %vm260_vm3, %v258_v26, 0.0 }
 0x178   : > { %v262_v28 = vrot.slane %v261_v27, 4 }
 0x17a   : > { %v263_v29 = vadd.f32 %v262_v28, %v261_v27 }
 0x17c   : > { %v264_v30 = vrot.slane %v263_v29, 2 }
 0x17e   : > { %v265_v31 = vadd.f32 %v264_v30, %v263_v29 }
 0x180   : > { %v266_v32 = vrot.slane %v265_v31, 1 }
 0x182   : > { %v267_v34 = vadd.f32 %v266_v32, %v265_v31 }
 0x184   : > { %v268_v35 = vadd.f32 %v267_v34, %v259_v33 }
 0x186   : > { %270 = vst.msk [vmem:[%s604_s17] sm:$0x1] %vm223_vm0, %v268_v35 }
 0x18d   : > { %v274_v36 = vld [vmem:[%s604_s17] sm:$0x1] }
 0x18e   : > { %v275_v37 = vmul.f32 2.0, %v274_v36 }
 0x190   : > { %276 = vst.msk [vmem:[%s604_s17] sm:$0x1] %vm223_vm0, %v275_v37 }
 0x191 PF: > { %s15_s13 = sadd.s32 1, %s512_s13   ;;  %s646_s9 = smov %s500_s10 }
 0x192   : > { %p12_p10 = scmp.ge.s32.totalorder %s15_s13, 4   ;;  %s625_s10 = smov 0  }
 0x193   : > { %s647_s11 = smov %s508_s12  ;;  %s648_s12 = smov %s650_s15 }
 0x194   :  { %14 = sbr.rel (!%p12_p10) target bundleno = 4 (0x4), region = 79 }
 0x19b   :  { %294 = vsyncpa [#allocation3], 1 }
 0x19c   :  { %296 = vsyncpa [#allocation3 + $0x1], 1 }

</bundles_post_ra>
